<compile_context>
chip_gen: v7x
topology: tpu7x:2x2x1
jax: 0.10.0
libtpu: 0.0.40
codegen_flags: <defaults>
</compile_context>

<pallas_src>
import jax
import jax.numpy as jnp
from jax import lax
from jax.experimental import pallas as pl
from jax.experimental.pallas import tpu as pltpu


def _round_up(x, m):
    return ((x + m - 1) // m) * m


def _cdiv(a, b):
    return -(-a // b)


def _vmem_capacity_bytes():
    try:
        return int(pltpu.get_tpu_info().vmem_capacity_bytes)
    except Exception:
        return 128 << 20  # conservative default (v5e/v6e); v7x reports 64 MiB


def _is_tracer(x):
    try:
        return isinstance(x, jax.core.Tracer)
    except Exception:
        return True  # be conservative: do not cache


# ----------------------------------------------------------------------------- kernel


def _coda_prompt_kernel(x_ref, ahat_ref, asq_ref, pk_ref, pv_ref, ek_ref, ev_ref):
    eps = 1e-12  # matches torch.nn.functional.normalize default eps
    x = x_ref[...].astype(jnp.float32)            # (TB, D)
    sim_dt = ahat_ref.dtype

    # Contract last dim of both operands -> MXU directly, no in-kernel transpose.
    contract = (((1,), (1,)), ((), ()))
    # num[b,k]    = sum_d x[b,d] * A[k,d] * nK[k,d]
    # den_sq[b,k] = sum_d (x[b,d] * A[k,d])^2
    num = lax.dot_general(x.astype(sim_dt), ahat_ref[...], contract,
                          preferred_element_type=jnp.float32)
    den_sq = lax.dot_general((x * x).astype(sim_dt), asq_ref[...], contract,
                             preferred_element_type=jnp.float32)

    # aq_k = num / max(sqrt(den_sq), eps) == num * rsqrt(max(den_sq, eps^2)); EUP slot.
    aq_k = num * lax.rsqrt(jnp.maximum(den_sq, eps * eps))
    aq_k = aq_k.astype(pk_ref.dtype)

    # Dominant mixing matmul, f32 accumulation; Ek/Ev written directly (lane-dense).
    ek_ref[...] = jnp.dot(aq_k, pk_ref[...],
                          preferred_element_type=jnp.float32).astype(ek_ref.dtype)
    ev_ref[...] = jnp.dot(aq_k, pv_ref[...],
                          preferred_element_type=jnp.float32).astype(ev_ref.dtype)


# ----------------------------------------------------------------------------- tiling


def _choose_batch_tile(B, D, LD, Kp, sim_isz, p_isz, out_isz, budget_bytes):
    """Pick (TB, nb): TB a multiple of 8 sized against the per-generation VMEM
    budget, with minimal batch padding and >=2 grid steps when B allows."""
    b8 = _round_up(max(B, 1), 8)
    # VMEM residents (single-buffered constants) + per-batch-row pipelined traffic.
    resident = 2 * Kp * D * sim_isz + Kp * LD * p_isz
    per_row = 2 * (D * 4) + 2 * (LD * out_isz)   # dbl-buffered x row + Ek/Ev rows
    avail = max(budget_bytes - resident, per_row * 8)
    tb_max = max(8, min(1024, (avail // per_row) // 8 * 8))
    # Prefer >= 2 grid steps: lets ("parallel",) shard across v7x's 2 TensorCores;
    # one extra ~0.35us grid step is negligible on single-TC chips.
    if b8 >= 16:
        tb_max = min(tb_max, max(8, (b8 // 2) // 8 * 8))
    # Minimize batch padding for the resulting step count.
    nb = _cdiv(b8, tb_max)
    tb = _round_up(_cdiv(b8, nb), 8)
    nb = _cdiv(b8, tb)
    return tb, nb


# ----------------------------------------------------------------------------- pool prep (cached)

_POOL_PREP_CACHE = {}


def _prepare_pool(params, l, task_count, n_tasks, prompt_dtype, similarity_dtype):
    """train=False slicing K[0:f], A[0:f], p[0:f]; pool dim zero-padded to a
    multiple of 128; precompute A*n_K, A*A and split p into key/value halves.
    Cached per (params, layer, task_count, dtypes)."""
    K = params[f'e_k_{l}']
    A = params[f'e_a_{l}']
    p = params[f'e_p_{l}']
    cache_key = (id(params), l, int(task_count), int(n_tasks),
                 jnp.dtype(prompt_dtype).name, jnp.dtype(similarity_dtype).name)
    concrete = not (_is_tracer(K) or _is_tracer(A) or _is_tracer(p))
    if concrete and cache_key in _POOL_PREP_CACHE:
        return _POOL_PREP_CACHE[cache_key]

    pool, L, emb_d = p.shape
    D = K.shape[1]
    pt = pool // n_tasks
    f = (task_count + 1) * pt
    i = L // 2
    Kp = _round_up(max(f, 1), 128)     # lane dim of aq_k / sublane dim of P tiles
    pad_k = Kp - f

    eps = 1e-12
    Kf = K[:f].astype(jnp.float32)
    Af = A[:f].astype(jnp.float32)
    k_norm = jnp.sqrt(jnp.sum(Kf * Kf, axis=1, keepdims=True))
    nK = Kf / jnp.maximum(k_norm, eps)
    A_hat = jnp.pad(Af * nK, ((0, pad_k), (0, 0))).astype(similarity_dtype)
    A_sq = jnp.pad(Af * Af, ((0, pad_k), (0, 0))).astype(similarity_dtype)

    pf = p[:f].astype(jnp.float32)
    Pk = jnp.pad(pf[:, :i, :].reshape(f, i * emb_d),
                 ((0, pad_k), (0, 0))).astype(prompt_dtype)
    Pv = jnp.pad(pf[:, i:, :].reshape(f, (L - i) * emb_d),
                 ((0, pad_k), (0, 0))).astype(prompt_dtype)

    prep = (A_hat, A_sq, Pk, Pv, Kp, D, L, emb_d, i)
    if concrete:
        _POOL_PREP_CACHE[cache_key] = prep
    return prep


# ----------------------------------------------------------------------------- forward


def coda_prompt_forward(params, x_querry, l, x_block, *, n_tasks, task_count=0,
                        prompt_dtype=jnp.bfloat16, out_dtype=None,
                        similarity_dtype=jnp.float32):
    """Eval-mode (train=False) CodaPrompt.forward. Returns ([Ek, Ev], loss, x_block).

    prompt_dtype     : pool / aq_k dtype for the mixing matmul (bf16 halves the big read).
    out_dtype        : Ek/Ev dtype (defaults to prompt_dtype; bf16 halves the dominant
                       output writeback — the kernel is HBM-bound on v5e/v6e/v7x).
    similarity_dtype : dtype of the two small similarity matmuls (bf16 recommended on
                       v5e where f32 matmuls are multi-pass; f32 for exactness).
    """
    e_layers = (0, 1, 2, 3, 4)
    if l not in e_layers:
        return None, 0.0, x_block
    if out_dtype is None:
        out_dtype = prompt_dtype

    A_hat, A_sq, Pk, Pv, Kp, D, L, emb_d, i = _prepare_pool(
        params, l, task_count, n_tasks, prompt_dtype, similarity_dtype)
    LDk = i * emb_d
    LDv = (L - i) * emb_d
    LD = LDk + LDv

    sim_isz = jnp.dtype(similarity_dtype).itemsize
    p_isz = jnp.dtype(prompt_dtype).itemsize
    out_isz = jnp.dtype(out_dtype).itemsize

    # Per-generation VMEM sizing (128 MiB on v5e/v6e, 64 MiB per TC on v7x).
    vmem_cap = _vmem_capacity_bytes()
    budget = max(int(vmem_cap * 0.75) - (8 << 20), 16 << 20)

    B = x_querry.shape[0]
    TB, nb = _choose_batch_tile(B, D, LD, Kp, sim_isz, p_isz, out_isz, budget)
    B_pad = nb * TB
    x_in = jnp.pad(x_querry.astype(jnp.float32), ((0, B_pad - B), (0, 0)))

    flops = 2 * (2 * B_pad * D * Kp) + 2 * B_pad * Kp * LD
    bytes_accessed = (4 * B_pad * D + sim_isz * 2 * Kp * D
                      + p_isz * Kp * LD + out_isz * B_pad * LD)
    cost = pl.CostEstimate(flops=flops, transcendentals=B_pad * Kp,
                           bytes_accessed=bytes_accessed)

    # Limit sized to cover even the double-buffered-constants fallback, capped at
    # 85% of physical VMEM (headroom for Mosaic internal scratch / semaphores).
    vmem_est = (2 * TB * D * 4 + 2 * TB * LD * out_isz
                + 2 * (2 * Kp * D * sim_isz + Kp * LD * p_isz))
    vmem_limit = int(min(int(vmem_cap * 0.85), max(2 * vmem_est, 16 << 20)))

    def _run(single_buffer_constants):
        const_kw = ({"pipeline_mode": pl.Buffered(1)}
                    if single_buffer_constants else {})
        return pl.pallas_call(
            _coda_prompt_kernel,
            out_shape=(jax.ShapeDtypeStruct((B_pad, LDk), out_dtype),
                       jax.ShapeDtypeStruct((B_pad, LDv), out_dtype)),
            grid=(nb,),
            in_specs=[
                pl.BlockSpec((TB, D), lambda b: (b, 0)),                 # x: tiled over batch
                pl.BlockSpec((Kp, D), lambda b: (0, 0), **const_kw),     # A*n_K: resident
                pl.BlockSpec((Kp, D), lambda b: (0, 0), **const_kw),     # A*A:   resident
                pl.BlockSpec((Kp, LDk), lambda b: (0, 0), **const_kw),   # P key half
                pl.BlockSpec((Kp, LDv), lambda b: (0, 0), **const_kw),   # P value half
            ],
            out_specs=(pl.BlockSpec((TB, LDk), lambda b: (b, 0)),
                       pl.BlockSpec((TB, LDv), lambda b: (b, 0))),
            compiler_params=pltpu.CompilerParams(
                dimension_semantics=("parallel",),
                vmem_limit_bytes=vmem_limit),
            cost_estimate=cost,
        )(x_in, A_hat, A_sq, Pk, Pv)

    try:
        ek_flat, ev_flat = _run(True)
    except Exception:
        # Buffered(1) unsupported on this jax build: default double-buffered constants.
        ek_flat, ev_flat = _run(False)

    Ek = ek_flat[:B].reshape(B, i, emb_d)
    Ev = ev_flat[:B].reshape(B, L - i, emb_d)
    # TODO(synk): train=True branch (prefix detach/concat + ortho_penalty loss) not implemented.
    loss = 0.0
    return [Ek, Ev], loss, x_block


# ----------------------------------------------------------------------------- test helpers


def _ortho_init(key, pool, dim, pt):
    """Mimic CodaPrompt.gram_schmidt at task_count==0: first `pt` rows are a random
    orthonormal set, remaining rows are zero."""
    g = jax.random.normal(key, (dim, pt), dtype=jnp.float32)
    q, _ = jnp.linalg.qr(g)
    out = jnp.zeros((pool, dim), dtype=jnp.float32)
    return out.at[:pt].set(q.T)


def make_coda_prompt_params(key, emb_d, key_d, e_pool_size, e_p_length, n_tasks):
    e_layers = [0, 1, 2, 3, 4]
    pt = e_pool_size // n_tasks
    params = {}
    for e in e_layers:
        kp, kk, ka = jax.random.split(jax.random.fold_in(key, e), 3)
        p2d = _ortho_init(kp, e_pool_size, e_p_length * emb_d, pt)
        params[f'e_p_{e}'] = p2d.reshape(e_pool_size, e_p_length, emb_d)
        params[f'e_k_{e}'] = _ortho_init(kk, e_pool_size, key_d, pt)
        params[f'e_a_{e}'] = _ortho_init(ka, e_pool_size, key_d, pt)
    return params


def _reference_forward(K, A, p, x, f):
    """Pure-JAX mirror of the PyTorch einsum path (eval, slice to 0:f)."""
    K, A, p = K[:f], A[:f], p[:f]
    a_q = jnp.einsum('bd,kd->bkd', x, A)
    nK = K / jnp.maximum(jnp.linalg.norm(K, axis=1, keepdims=True), 1e-12)
    q = a_q / jnp.maximum(jnp.linalg.norm(a_q, axis=2, keepdims=True), 1e-12)
    aq_k = jnp.einsum('bkd,kd->bk', q, nK)
    P_ = jnp.einsum('bk,kld->bld', aq_k, p)
    i = p.shape[1] // 2
    return P_[:, :i, :], P_[:, i:, :]


if __name__ == "__main__":
    emb_d = 32          # embedding dim
    key_d = 32          # key dim (== emb_d so 'bd,kd->bkd' is consistent)
    e_pool_size = 8     # prompt_param[0]
    e_p_length = 8      # prompt_param[1]
    n_tasks = 2
    B = 2
    layer = 0

    key = jax.random.PRNGKey(0)
    k_params, k_x, k_blk = jax.random.split(key, 3)

    params = make_coda_prompt_params(k_params, emb_d, key_d, e_pool_size,
                                     e_p_length, n_tasks)
    x_querry = jax.random.normal(k_x, (B, key_d), dtype=jnp.float32)
    x_block = jax.random.normal(k_blk, (B, 8, emb_d), dtype=jnp.float32)

    # Reference (eval path, task_count=0 -> slice 0:f).
    f = (0 + 1) * (e_pool_size // n_tasks)
    Ek_ref, Ev_ref = _reference_forward(params[f'e_k_{layer}'],
                                        params[f'e_a_{layer}'],
                                        params[f'e_p_{layer}'],
                                        x_querry, f)

    # 1) f32 path: exact (up to f32 rounding) vs. reference.
    (p_ret32, loss32, xb32) = coda_prompt_forward(
        params, x_querry, layer, x_block, n_tasks=n_tasks, task_count=0,
        prompt_dtype=jnp.float32)
    Ek32, Ev32 = p_ret32
    jax.block_until_ready((Ek32, Ev32, xb32))
    assert Ek32.shape == (B, e_p_length // 2, emb_d)
    assert Ev32.shape == (B, e_p_length // 2, emb_d)
    assert jnp.allclose(Ek32, Ek_ref, atol=1e-5, rtol=1e-5)
    assert jnp.allclose(Ev32, Ev_ref, atol=1e-5, rtol=1e-5)
    assert jnp.array_equal(xb32, x_block)

    # 2) bf16 path (performance default: bf16 pool, bf16 mixing, bf16 output).
    (p_ret16, loss16, xb16) = coda_prompt_forward(
        params, x_querry, layer, x_block, n_tasks=n_tasks, task_count=0,
        prompt_dtype=jnp.bfloat16)
    Ek16, Ev16 = p_ret16
    jax.block_until_ready((Ek16, Ev16, xb16))
    assert Ek16.dtype == jnp.bfloat16 and Ev16.dtype == jnp.bfloat16
    assert jnp.allclose(Ek16.astype(jnp.float32), Ek_ref, atol=2e-2, rtol=2e-2)
    assert jnp.allclose(Ev16.astype(jnp.float32), Ev_ref, atol=2e-2, rtol=2e-2)

    # Cached-prep path: second call with identical (layer, task_count, dtypes).
    (p_ret16b, _, _) = coda_prompt_forward(
        params, x_querry, layer, x_block, n_tasks=n_tasks, task_count=0,
        prompt_dtype=jnp.bfloat16)
    jax.block_until_ready(p_ret16b[0])
    assert jnp.allclose(p_ret16b[0].astype(jnp.float32),
                        Ek16.astype(jnp.float32), atol=1e-6)

    # Non-prompted layer passes through unchanged.
    none_ret, loss_none, xb_none = coda_prompt_forward(
        params, x_querry, 7, x_block, n_tasks=n_tasks, task_count=0)
    assert none_ret is None and jnp.array_equal(xb_none, x_block)

    print("KERNEL_OK")
</pallas_src>

<mosaic_0001>
module attributes {stable_mosaic.version = 11 : i64} {
  func.func @_coda_prompt_kernel(%arg0: i32, %arg1: memref<8x32xf32, #tpu.memory_space<vmem>>, %arg2: memref<128x32xf32, #tpu.memory_space<vmem>>, %arg3: memref<128x32xf32, #tpu.memory_space<vmem>>, %arg4: memref<128x128xf32, #tpu.memory_space<vmem>>, %arg5: memref<128x128xf32, #tpu.memory_space<vmem>>, %arg6: memref<8x128xf32, #tpu.memory_space<vmem>>, %arg7: memref<8x128xf32, #tpu.memory_space<vmem>>) attributes {dimension_semantics = [#tpu.dimension_semantics<parallel>], iteration_bounds = array<i64: 1>, scalar_prefetch = 0 : i64, scratch_operands = 0 : i64, tpu.core_type = #tpu.core_type<tc>, window_params = [{transform_indices = @transform_0, window_bounds = array<i64: 8, 32>}, {pipeline_mode = #tpu.pipeline_mode<synchronous>, transform_indices = @transform_1, window_bounds = array<i64: 128, 32>}, {pipeline_mode = #tpu.pipeline_mode<synchronous>, transform_indices = @transform_2, window_bounds = array<i64: 128, 32>}, {pipeline_mode = #tpu.pipeline_mode<synchronous>, transform_indices = @transform_3, window_bounds = array<i64: 128, 128>}, {pipeline_mode = #tpu.pipeline_mode<synchronous>, transform_indices = @transform_4, window_bounds = array<i64: 128, 128>}, {transform_indices = @transform_5, window_bounds = array<i64: 8, 128>}, {transform_indices = @transform_6, window_bounds = array<i64: 8, 128>}]} {
    %c0 = arith.constant 0 : index
    %c0_0 = arith.constant 0 : index
    %0 = vector.load %arg1[%c0, %c0_0] : memref<8x32xf32, #tpu.memory_space<vmem>>, vector<8x32xf32>
    %c0_1 = arith.constant 0 : index
    %c0_2 = arith.constant 0 : index
    %1 = vector.load %arg2[%c0_1, %c0_2] : memref<128x32xf32, #tpu.memory_space<vmem>>, vector<128x32xf32>
    %cst = arith.constant dense<0.000000e+00> : vector<8x128xf32>
    %2 = tpu.matmul %0, %1, %cst {dimension_numbers = #tpu.dot_dimension_numbers<[1], [1], [0], [0], [0, 0, 1, 0], [], []>} : vector<8x32xf32>, vector<128x32xf32>, vector<8x128xf32> -> vector<8x128xf32>
    %3 = arith.mulf %0, %0 : vector<8x32xf32>
    %c0_3 = arith.constant 0 : index
    %c0_4 = arith.constant 0 : index
    %4 = vector.load %arg3[%c0_3, %c0_4] : memref<128x32xf32, #tpu.memory_space<vmem>>, vector<128x32xf32>
    %cst_5 = arith.constant dense<0.000000e+00> : vector<8x128xf32>
    %5 = tpu.matmul %3, %4, %cst_5 {dimension_numbers = #tpu.dot_dimension_numbers<[1], [1], [0], [0], [0, 0, 1, 0], [], []>} : vector<8x32xf32>, vector<128x32xf32>, vector<8x128xf32> -> vector<8x128xf32>
    %cst_6 = arith.constant 1.000000e-24 : f32
    %6 = vector.broadcast %cst_6 : f32 to vector<8x128xf32>
    %7 = arith.maximumf %5, %6 : vector<8x128xf32>
    %8 = math.rsqrt %7 : vector<8x128xf32>
    %9 = arith.mulf %2, %8 : vector<8x128xf32>
    %c0_7 = arith.constant 0 : index
    %c0_8 = arith.constant 0 : index
    %10 = vector.load %arg4[%c0_7, %c0_8] : memref<128x128xf32, #tpu.memory_space<vmem>>, vector<128x128xf32>
    %cst_9 = arith.constant dense<0.000000e+00> : vector<8x128xf32>
    %11 = tpu.matmul %9, %10, %cst_9 {dimension_numbers = #tpu.dot_dimension_numbers<[1], [0], [0], [1], [0, 0, 1, 1], [], []>} : vector<8x128xf32>, vector<128x128xf32>, vector<8x128xf32> -> vector<8x128xf32>
    %c0_10 = arith.constant 0 : index
    %c0_11 = arith.constant 0 : index
    %12 = vector.load %arg6[%c0_10, %c0_11] : memref<8x128xf32, #tpu.memory_space<vmem>>, vector<8x128xf32>
    tpu.vector_store %arg6[%c0_10, %c0_11], %11 {strides = array<i32>} : memref<8x128xf32, #tpu.memory_space<vmem>>, vector<8x128xf32>,
    %c0_12 = arith.constant 0 : index
    %c0_13 = arith.constant 0 : index
    %13 = vector.load %arg5[%c0_12, %c0_13] : memref<128x128xf32, #tpu.memory_space<vmem>>, vector<128x128xf32>
    %cst_14 = arith.constant dense<0.000000e+00> : vector<8x128xf32>
    %14 = tpu.matmul %9, %13, %cst_14 {dimension_numbers = #tpu.dot_dimension_numbers<[1], [0], [0], [1], [0, 0, 1, 1], [], []>} : vector<8x128xf32>, vector<128x128xf32>, vector<8x128xf32> -> vector<8x128xf32>
    %c0_15 = arith.constant 0 : index
    %c0_16 = arith.constant 0 : index
    %15 = vector.load %arg7[%c0_15, %c0_16] : memref<8x128xf32, #tpu.memory_space<vmem>>, vector<8x128xf32>
    tpu.vector_store %arg7[%c0_15, %c0_16], %14 {strides = array<i32>} : memref<8x128xf32, #tpu.memory_space<vmem>>, vector<8x128xf32>,
    return
  }
  func.func @transform_0(%arg0: i32) -> (i32, i32) {
    %c0_i32 = arith.constant 0 : i32
    %c0_i32_0 = arith.constant 0 : i32
    return %arg0, %c0_i32 : i32, i32
  }
  func.func @transform_1(%arg0: i32) -> (i32, i32) {
    %c0_i32 = arith.constant 0 : i32
    %c0_i32_0 = arith.constant 0 : i32
    %c0_i32_1 = arith.constant 0 : i32
    return %c0_i32, %c0_i32_0 : i32, i32
  }
  func.func @transform_2(%arg0: i32) -> (i32, i32) {
    %c0_i32 = arith.constant 0 : i32
    %c0_i32_0 = arith.constant 0 : i32
    %c0_i32_1 = arith.constant 0 : i32
    return %c0_i32, %c0_i32_0 : i32, i32
  }
  func.func @transform_3(%arg0: i32) -> (i32, i32) {
    %c0_i32 = arith.constant 0 : i32
    %c0_i32_0 = arith.constant 0 : i32
    %c0_i32_1 = arith.constant 0 : i32
    return %c0_i32, %c0_i32_0 : i32, i32
  }
  func.func @transform_4(%arg0: i32) -> (i32, i32) {
    %c0_i32 = arith.constant 0 : i32
    %c0_i32_0 = arith.constant 0 : i32
    %c0_i32_1 = arith.constant 0 : i32
    return %c0_i32, %c0_i32_0 : i32, i32
  }
  func.func @transform_5(%arg0: i32) -> (i32, i32) {
    %c0_i32 = arith.constant 0 : i32
    %c0_i32_0 = arith.constant 0 : i32
    return %arg0, %c0_i32 : i32, i32
  }
  func.func @transform_6(%arg0: i32) -> (i32, i32) {
    %c0_i32 = arith.constant 0 : i32
    %c0_i32_0 = arith.constant 0 : i32
    return %arg0, %c0_i32 : i32, i32
  }
}

module attributes {stable_mosaic.version = 11 : i64} {
  func.func @_coda_prompt_kernel(%arg0: i32, %arg1: memref<8x32xf32, #tpu.memory_space<vmem>>, %arg2: memref<128x32xf32, #tpu.memory_space<vmem>>, %arg3: memref<128x32xf32, #tpu.memory_space<vmem>>, %arg4: memref<128x128xf32, #tpu.memory_space<vmem>>, %arg5: memref<128x128xf32, #tpu.memory_space<vmem>>, %arg6: memref<8x128xf32, #tpu.memory_space<vmem>>, %arg7: memref<8x128xf32, #tpu.memory_space<vmem>>) attributes {dimension_semantics = [#tpu.dimension_semantics<parallel>], iteration_bounds = array<i64: 1>, scalar_prefetch = 0 : i64, scratch_operands = 0 : i64, tpu.core_type = #tpu.core_type<tc>, window_params = [{transform_indices = @transform_0, window_bounds = array<i64: 8, 32>}, {pipeline_mode = #tpu.pipeline_mode<synchronous>, transform_indices = @transform_1, window_bounds = array<i64: 128, 32>}, {pipeline_mode = #tpu.pipeline_mode<synchronous>, transform_indices = @transform_2, window_bounds = array<i64: 128, 32>}, {pipeline_mode = #tpu.pipeline_mode<synchronous>, transform_indices = @transform_3, window_bounds = array<i64: 128, 128>}, {pipeline_mode = #tpu.pipeline_mode<synchronous>, transform_indices = @transform_4, window_bounds = array<i64: 128, 128>}, {transform_indices = @transform_5, window_bounds = array<i64: 8, 128>}, {transform_indices = @transform_6, window_bounds = array<i64: 8, 128>}]} {
    %c0 = arith.constant 0 : index
    %c0_0 = arith.constant 0 : index
    %0 = vector.load %arg1[%c0, %c0_0] : memref<8x32xf32, #tpu.memory_space<vmem>>, vector<8x32xf32>
    %c0_1 = arith.constant 0 : index
    %c0_2 = arith.constant 0 : index
    %1 = vector.load %arg2[%c0_1, %c0_2] : memref<128x32xf32, #tpu.memory_space<vmem>>, vector<128x32xf32>
    %cst = arith.constant dense<0.000000e+00> : vector<8x128xf32>
    %2 = tpu.matmul %0, %1, %cst {dimension_numbers = #tpu.dot_dimension_numbers<[1], [1], [0], [0], [0, 0, 1, 0], [], []>} : vector<8x32xf32>, vector<128x32xf32>, vector<8x128xf32> -> vector<8x128xf32>
    %3 = arith.mulf %0, %0 : vector<8x32xf32>
    %c0_3 = arith.constant 0 : index
    %c0_4 = arith.constant 0 : index
    %4 = vector.load %arg3[%c0_3, %c0_4] : memref<128x32xf32, #tpu.memory_space<vmem>>, vector<128x32xf32>
    %cst_5 = arith.constant dense<0.000000e+00> : vector<8x128xf32>
    %5 = tpu.matmul %3, %4, %cst_5 {dimension_numbers = #tpu.dot_dimension_numbers<[1], [1], [0], [0], [0, 0, 1, 0], [], []>} : vector<8x32xf32>, vector<128x32xf32>, vector<8x128xf32> -> vector<8x128xf32>
    %cst_6 = arith.constant 1.000000e-24 : f32
    %6 = vector.broadcast %cst_6 : f32 to vector<8x128xf32>
    %7 = arith.maximumf %5, %6 : vector<8x128xf32>
    %8 = math.rsqrt %7 : vector<8x128xf32>
    %9 = arith.mulf %2, %8 : vector<8x128xf32>
    %c0_7 = arith.constant 0 : index
    %c0_8 = arith.constant 0 : index
    %10 = vector.load %arg4[%c0_7, %c0_8] : memref<128x128xf32, #tpu.memory_space<vmem>>, vector<128x128xf32>
    %cst_9 = arith.constant dense<0.000000e+00> : vector<8x128xf32>
    %11 = tpu.matmul %9, %10, %cst_9 {dimension_numbers = #tpu.dot_dimension_numbers<[1], [0], [0], [1], [0, 0, 1, 1], [], []>} : vector<8x128xf32>, vector<128x128xf32>, vector<8x128xf32> -> vector<8x128xf32>
    %c0_10 = arith.constant 0 : index
    %c0_11 = arith.constant 0 : index
    %12 = vector.load %arg6[%c0_10, %c0_11] : memref<8x128xf32, #tpu.memory_space<vmem>>, vector<8x128xf32>
    tpu.vector_store %arg6[%c0_10, %c0_11], %11 {strides = array<i32>} : memref<8x128xf32, #tpu.memory_space<vmem>>, vector<8x128xf32>,
    %c0_12 = arith.constant 0 : index
    %c0_13 = arith.constant 0 : index
    %13 = vector.load %arg5[%c0_12, %c0_13] : memref<128x128xf32, #tpu.memory_space<vmem>>, vector<128x128xf32>
    %cst_14 = arith.constant dense<0.000000e+00> : vector<8x128xf32>
    %14 = tpu.matmul %9, %13, %cst_14 {dimension_numbers = #tpu.dot_dimension_numbers<[1], [0], [0], [1], [0, 0, 1, 1], [], []>} : vector<8x128xf32>, vector<128x128xf32>, vector<8x128xf32> -> vector<8x128xf32>
    %c0_15 = arith.constant 0 : index
    %c0_16 = arith.constant 0 : index
    %15 = vector.load %arg7[%c0_15, %c0_16] : memref<8x128xf32, #tpu.memory_space<vmem>>, vector<8x128xf32>
    tpu.vector_store %arg7[%c0_15, %c0_16], %14 {strides = array<i32>} : memref<8x128xf32, #tpu.memory_space<vmem>>, vector<8x128xf32>,
    return
  }
  func.func @transform_0(%arg0: i32) -> (i32, i32) {
    %c0_i32 = arith.constant 0 : i32
    %c0_i32_0 = arith.constant 0 : i32
    return %arg0, %c0_i32 : i32, i32
  }
  func.func @transform_1(%arg0: i32) -> (i32, i32) {
    %c0_i32 = arith.constant 0 : i32
    %c0_i32_0 = arith.constant 0 : i32
    %c0_i32_1 = arith.constant 0 : i32
    return %c0_i32, %c0_i32_0 : i32, i32
  }
  func.func @transform_2(%arg0: i32) -> (i32, i32) {
    %c0_i32 = arith.constant 0 : i32
    %c0_i32_0 = arith.constant 0 : i32
    %c0_i32_1 = arith.constant 0 : i32
    return %c0_i32, %c0_i32_0 : i32, i32
  }
  func.func @transform_3(%arg0: i32) -> (i32, i32) {
    %c0_i32 = arith.constant 0 : i32
    %c0_i32_0 = arith.constant 0 : i32
    %c0_i32_1 = arith.constant 0 : i32
    return %c0_i32, %c0_i32_0 : i32, i32
  }
  func.func @transform_4(%arg0: i32) -> (i32, i32) {
    %c0_i32 = arith.constant 0 : i32
    %c0_i32_0 = arith.constant 0 : i32
    %c0_i32_1 = arith.constant 0 : i32
    return %c0_i32, %c0_i32_0 : i32, i32
  }
  func.func @transform_5(%arg0: i32) -> (i32, i32) {
    %c0_i32 = arith.constant 0 : i32
    %c0_i32_0 = arith.constant 0 : i32
    return %arg0, %c0_i32 : i32, i32
  }
  func.func @transform_6(%arg0: i32) -> (i32, i32) {
    %c0_i32 = arith.constant 0 : i32
    %c0_i32_0 = arith.constant 0 : i32
    return %arg0, %c0_i32 : i32, i32
  }
}

</mosaic_0001>

<bundles_post_ra>
// kernel: tpu_custom_call.1
= control target key start
LH: loop header
LB: loop body
LE: loop exit
PB: predicated region body
PF: predicated region fallthrough
CT: control target
= control target key end

     0   :  { %12 = vsyncpa [#allocation3], 0  ;;  %vm41_vm0 = vcmask 261120   ;;  %v915_v2 = vmov 0.0|0.0   ;;  %vm916_vm2 = vmmov 0   ;;  %v917_v7 = vmov 0.0   ;;  %s1261_s0 = inlined_call_operand.vmem [shape: f32[8,32], index: 0, kind: input, shape index: {}]   ;;  %s1262_s1 = inlined_call_operand.vmem [shape: f32[128,32], index: 1, kind: input, shape index: {}]   ;;  %s1263_s2 = inlined_call_operand.vmem [shape: f32[128,32], index: 2, kind: input, shape index: {}]   ;;  %s1264_s3 = inlined_call_operand.vmem [shape: f32[128,128], index: 3, kind: input, shape index: {}]   ;;  %s1265_s4 = inlined_call_operand.vmem [shape: f32[128,128], index: 4, kind: input, shape index: {}]   ;;  %s1266_s5 = inlined_call_operand.hbm [shape: f32[8,128], index: 5, kind: output, shape index: {0}]   ;;  %s1267_s6 = inlined_call_operand.hbm [shape: f32[8,128], index: 6, kind: output, shape index: {1}]  }
   0x1   :  { %v164_v0 = vld [vmem:[%s1263_s2] sm:$0xff]  ;;  %v165_v1 = vld [vmem:[%s1263_s2 + $0x8] sm:$0xff]  ;;  %780 = vmatprep.subr.bf16.mxu1 %v915_v2  ;;  %vm964_vm1 = vmpackc.low %vm41_vm0, %vm41_vm0  ;;  %748 = vmatprep.subr.bf16.mxu0 %v915_v2 }
   0x2   :  { %v781_v4 = vpack.c.bf16 %v165_v1, %v164_v0  ;;  %v25_v5 = vld [vmem:[%s1262_s1] sm:$0xff]  ;;  %v26_v6 = vld [vmem:[%s1262_s1 + $0x8] sm:$0xff]  ;;  %675 = vmatprep.mubr.msk.f32.mxu1 %vm916_vm2, %v917_v7  ;;  %640 = vmatprep.mubr.msk.f32.mxu0 %vm916_vm2, %v917_v7  ;;  %v166_v9 = vld [vmem:[%s1263_s2 + $0x10] sm:$0xff] }
   0x3   :  { %v749_v8 = vpack.c.bf16 %v26_v6, %v25_v5  ;;  %v167_v10 = vld [vmem:[%s1263_s2 + $0x18] sm:$0xff]  ;;  %v27_v11 = vld [vmem:[%s1262_s1 + $0x10] sm:$0xff]  ;;  %v168_v15 = vld [vmem:[%s1263_s2 + $0x20] sm:$0xff] }
   0x4   :  { %783 = vmatpush3.bf16.xpose.msk.msra.mxu1 %vm964_vm1, %v781_v4  ;;  %v28_v12 = vld [vmem:[%s1262_s1 + $0x18] sm:$0xff]  ;;  %v785_v13 = vpack.c.bf16 %v167_v10, %v166_v9  ;;  %v169_v16 = vld [vmem:[%s1263_s2 + $0x28] sm:$0xff]  ;;  %v29_v17 = vld [vmem:[%s1262_s1 + $0x20] sm:$0xff] }
   0x5   :  { %784 = vmatprep.subr.bf16.mxu1 %v915_v2  ;;  %751 = vmatpush3.bf16.xpose.msk.msra.mxu0 %vm964_vm1, %v749_v8  ;;  %v753_v14 = vpack.c.bf16 %v28_v12, %v27_v11  ;;  %v30_v18 = vld [vmem:[%s1262_s1 + $0x28] sm:$0xff]  ;;  %v789_v19 = vpack.c.bf16 %v169_v16, %v168_v15 }
   0x6   :  { %752 = vmatprep.subr.bf16.mxu0 %v915_v2 }
   0xc   :  { %787 = vmatpush3.bf16.xpose.msk.msra.mxu1 %vm964_vm1, %v785_v13 }
   0xd   :  { %788 = vmatprep.subr.bf16.mxu1 %v915_v2  ;;  %755 = vmatpush3.bf16.xpose.msk.msra.mxu0 %vm964_vm1, %v753_v14 }
   0xe   :  { %756 = vmatprep.subr.bf16.mxu0 %v915_v2 }
   0xf   :  { %13 = vsyncpa [#allocation5], 0  ;;  %v757_v20 = vpack.c.bf16 %v30_v18, %v29_v17  ;;  %v170_v21 = vld [vmem:[%s1263_s2 + $0x30] sm:$0xff]  ;;  %v171_v22 = vld [vmem:[%s1263_s2 + $0x38] sm:$0xff]  ;;  %s919_s23 = smov [#allocation4]  }
  0x10   :  { %v31_v23 = vld [vmem:[%s1262_s1 + $0x30] sm:$0xff]  ;;  %v32_v24 = vld [vmem:[%s1262_s1 + $0x38] sm:$0xff]  ;;  %v793_v25 = vpack.c.bf16 %v171_v22, %v170_v21  ;;  %v172_v27 = vld [vmem:[%s1263_s2 + $0x40] sm:$0xff]  ;;  %s494_s24 = sshll.u32 %s919_s23, 4  ;;  %s1230_s24 = int_to_ptr.vmem [resolvable:$true] %s494_s24 }
  0x11   :  { %v761_v26 = vpack.c.bf16 %v32_v24, %v31_v23  ;;  %v173_v28 = vld [vmem:[%s1263_s2 + $0x48] sm:$0xff]  ;;  %v33_v29 = vld [vmem:[%s1262_s1 + $0x40] sm:$0xff]  ;;  %v174_v33 = vld [vmem:[%s1263_s2 + $0x50] sm:$0xff] }
  0x12   :  { %v34_v30 = vld [vmem:[%s1262_s1 + $0x48] sm:$0xff]  ;;  %v797_v31 = vpack.c.bf16 %v173_v28, %v172_v27  ;;  %v175_v34 = vld [vmem:[%s1263_s2 + $0x58] sm:$0xff]  ;;  %v35_v35 = vld [vmem:[%s1262_s1 + $0x50] sm:$0xff] }
  0x13   :  { %v765_v32 = vpack.c.bf16 %v34_v30, %v33_v29  ;;  %v36_v36 = vld [vmem:[%s1262_s1 + $0x58] sm:$0xff]  ;;  %v801_v37 = vpack.c.bf16 %v175_v34, %v174_v33  ;;  %v176_v39 = vld [vmem:[%s1263_s2 + $0x60] sm:$0xff]  ;;  %v177_v40 = vld [vmem:[%s1263_s2 + $0x68] sm:$0xff] }
  0x14   :  { %791 = vmatpush3.bf16.xpose.msk.msra.mxu1 %vm964_vm1, %v789_v19  ;;  %v769_v38 = vpack.c.bf16 %v36_v36, %v35_v35  ;;  %v37_v41 = vld [vmem:[%s1262_s1 + $0x60] sm:$0xff]  ;;  %v38_v42 = vld [vmem:[%s1262_s1 + $0x68] sm:$0xff]  ;;  %v805_v43 = vpack.c.bf16 %v177_v40, %v176_v39  ;;  %v178_v45 = vld [vmem:[%s1263_s2 + $0x70] sm:$0xff] }
  0x15   :  { %792 = vmatprep.subr.bf16.mxu1 %v915_v2  ;;  %759 = vmatpush3.bf16.xpose.msk.msra.mxu0 %vm964_vm1, %v757_v20  ;;  %v773_v44 = vpack.c.bf16 %v38_v42, %v37_v41  ;;  %v179_v46 = vld [vmem:[%s1263_s2 + $0x78] sm:$0xff]  ;;  %v39_v47 = vld [vmem:[%s1262_s1 + $0x70] sm:$0xff]  ;;  %v24_v51 = vld [vmem:[%s1261_s0] sm:$0xff] }
  0x16   :  { %760 = vmatprep.subr.bf16.mxu0 %v915_v2  ;;  %v40_v48 = vld [vmem:[%s1262_s1 + $0x78] sm:$0xff]  ;;  %v809_v49 = vpack.c.bf16 %v179_v46, %v178_v45  ;;  %v391_v52 = vld [vmem:[%s1265_s4] sm:$0xff]  ;;  %v392_v53 = vld [vmem:[%s1265_s4 + $0x8] sm:$0xff]  ;;  %v163_v54 = vmul.f32 %v24_v51, %v24_v51 }
  0x17   :  { %v777_v50 = vpack.c.bf16 %v40_v48, %v39_v47  ;;  %v304_v55 = vld [vmem:[%s1264_s3] sm:$0xff]  ;;  %v305_v56 = vld [vmem:[%s1264_s3 + $0x8] sm:$0xff]  ;;  %v837_v57 = vpack.c.bf16 %v392_v53, %v391_v52  ;;  %v393_v58 = vld [vmem:[%s1265_s4 + $0x10] sm:$0xff] }
  0x18   :  { %v394_v59 = vld [vmem:[%s1265_s4 + $0x18] sm:$0xff]  ;;  %v813_v60 = vpack.c.bf16 %v305_v56, %v304_v55  ;;  %v306_v61 = vld [vmem:[%s1264_s3 + $0x10] sm:$0xff]  ;;  %v395_v0 = vld [vmem:[%s1265_s4 + $0x20] sm:$0xff] }
  0x19   :  { %v307_v62 = vld [vmem:[%s1264_s3 + $0x18] sm:$0xff]  ;;  %v840_v63 = vpack.c.bf16 %v394_v59, %v393_v58  ;;  %v396_v1 = vld [vmem:[%s1265_s4 + $0x28] sm:$0xff]  ;;  %v308_v4 = vld [vmem:[%s1264_s3 + $0x20] sm:$0xff] }
  0x1a   :  { %v816_v3 = vpack.c.bf16 %v307_v62, %v306_v61  ;;  %v309_v5 = vld [vmem:[%s1264_s3 + $0x28] sm:$0xff]  ;;  %v843_v6 = vpack.c.bf16 %v396_v1, %v395_v0  ;;  %v397_v8 = vld [vmem:[%s1265_s4 + $0x30] sm:$0xff]  ;;  %v311_v11 = vld [vmem:[%s1264_s3 + $0x38] sm:$0xff] }
  0x1b   :  { %v819_v9 = vpack.c.bf16 %v309_v5, %v308_v4  ;;  %v310_v10 = vld [vmem:[%s1264_s3 + $0x30] sm:$0xff]  ;;  %v312_v14 = vld [vmem:[%s1264_s3 + $0x40] sm:$0xff]  ;;  %v313_v15 = vld [vmem:[%s1264_s3 + $0x48] sm:$0xff] }
  0x1c   :  { %795 = vmatpush3.bf16.xpose.msk.msra.mxu1 %vm964_vm1, %v793_v25  ;;  %v822_v13 = vpack.c.bf16 %v311_v11, %v310_v10  ;;  %v399_v16 = vld [vmem:[%s1265_s4 + $0x40] sm:$0xff]  ;;  %v825_v17 = vpack.c.bf16 %v313_v15, %v312_v14  ;;  %v400_v18 = vld [vmem:[%s1265_s4 + $0x48] sm:$0xff]  ;;  %v314_v20 = vld [vmem:[%s1264_s3 + $0x50] sm:$0xff] }
  0x1d   :  { %796 = vmatprep.subr.bf16.mxu1 %v915_v2  ;;  %763 = vmatpush3.bf16.xpose.msk.msra.mxu0 %vm964_vm1, %v761_v26  ;;  %v849_v19 = vpack.c.bf16 %v400_v18, %v399_v16  ;;  %v315_v21 = vld [vmem:[%s1264_s3 + $0x58] sm:$0xff]  ;;  %v401_v22 = vld [vmem:[%s1265_s4 + $0x50] sm:$0xff]  ;;  %v316_v25 = vld [vmem:[%s1264_s3 + $0x60] sm:$0xff] }
  0x1e   :  { %764 = vmatprep.subr.bf16.mxu0 %v915_v2  ;;  %v828_v23 = vpack.c.bf16 %v315_v21, %v314_v20  ;;  %v402_v24 = vld [vmem:[%s1265_s4 + $0x58] sm:$0xff]  ;;  %v317_v26 = vld [vmem:[%s1264_s3 + $0x68] sm:$0xff]  ;;  %v403_v28 = vld [vmem:[%s1265_s4 + $0x60] sm:$0xff] }
  0x1f   :  { %v852_v27 = vpack.c.bf16 %v402_v24, %v401_v22  ;;  %v404_v29 = vld [vmem:[%s1265_s4 + $0x68] sm:$0xff]  ;;  %v831_v30 = vpack.c.bf16 %v317_v26, %v316_v25  ;;  %v319_v33 = vld [vmem:[%s1264_s3 + $0x78] sm:$0xff]  ;;  %v405_v34 = vld [vmem:[%s1265_s4 + $0x70] sm:$0xff] }
  0x20   :  { %v406_v36 = vld [vmem:[%s1265_s4 + $0x78] sm:$0xff] }
  0x24   :  { %799 = vmatpush3.bf16.xpose.msk.msra.mxu1 %vm964_vm1, %v797_v31  ;;  %v855_v31 = vpack.c.bf16 %v404_v29, %v403_v28 }
  0x25   :  { %800 = vmatprep.subr.bf16.mxu1 %v915_v2  ;;  %767 = vmatpush3.bf16.xpose.msk.msra.mxu0 %vm964_vm1, %v765_v32  ;;  %v318_v32 = vld [vmem:[%s1264_s3 + $0x70] sm:$0xff]  ;;  %s918_s3 = smov [#allocation2]  }
  0x26   :  { %768 = vmatprep.subr.bf16.mxu0 %v915_v2  ;;  %v834_v35 = vpack.c.bf16 %v319_v33, %v318_v32  ;;  %s484_s22 = sshll.u32 %s918_s3, 4  ;;  %s485_s22 = int_to_ptr.vmem [resolvable:$true] %s484_s22 }
  0x27   :  { %p872_p1 = scmp.lt.s32.totalorder %s485_s22, %s485_s22 }
  0x2c   :  { %803 = vmatpush3.bf16.xpose.msk.msra.mxu1 %vm964_vm1, %v801_v37  ;;  %v858_v37 = vpack.c.bf16 %v406_v36, %v405_v34 }
  0x2d   :  { %804 = vmatprep.subr.bf16.mxu1 %v915_v2  ;;  %771 = vmatpush3.bf16.xpose.msk.msra.mxu0 %vm964_vm1, %v769_v38 }
  0x2e   :  { %772 = vmatprep.subr.bf16.mxu0 %v915_v2 }
  0x34   :  { %807 = vmatpush3.bf16.xpose.msk.msra.mxu1 %vm964_vm1, %v805_v43 }
  0x35   :  { %808 = vmatprep.subr.bf16.mxu1 %v915_v2  ;;  %775 = vmatpush3.bf16.xpose.msk.msra.mxu0 %vm964_vm1, %v773_v44 }
  0x36   :  { %776 = vmatprep.subr.bf16.mxu0 %v915_v2 }
  0x3c   :  { %811 = vmatpush3.bf16.xpose.msk.msra.mxu1 %vm964_vm1, %v809_v49 }
  0x3d   :  { %836 = vmatprep.subr.bf16.mxu1 %v915_v2  ;;  %779 = vmatpush3.bf16.xpose.msk.msra.mxu0 %vm964_vm1, %v777_v50 }
  0x3e   :  { %812 = vmatprep.subr.bf16.mxu0 %v915_v2 }
  0x43   :  { %676 = vmatmul.mubr.msk.f32.vlgmr.msra.gmra.mrb[0].mxu1 %vm41_vm0, %v163_v54 }
  0x44   :  { %838 = vmatpush3.bf16.msra.mxu1 %v837_v57  ;;  %745 = vmatprep.mubr.msk.f32.mxu1 %vm916_vm2, %v917_v7 }
  0x45   :  { %641 = vmatmul.mubr.msk.f32.vlgmr.msra.gmra.mrb[0].mxu0 %vm41_vm0, %v24_v51  ;;  %839 = vmatprep.subr.bf16.mxu1 %v915_v2 }
  0x46   :  { %814 = vmatpush3.bf16.msra.mxu0 %v813_v60  ;;  %710 = vmatprep.mubr.msk.f32.mxu0 %vm916_vm2, %v917_v7  ;;  %v398_v7 = vld [vmem:[%s1265_s4 + $0x38] sm:$0xff]  ;;  %s867_s4 = scalar_lea.vmem %s485_s22, 128 }
  0x47   :  { %815 = vmatprep.subr.bf16.mxu0 %v915_v2  ;;  %v846_v12 = vpack.c.bf16 %v398_v7, %v397_v8  ;;  %p868_p0 = scmp.ne.s32.totalorder %s485_s22, %s867_s4  ;;  %p873_p2 = scmp.lt.s32.totalorder %s867_s4, %s867_s4 }
  0x48   :  { %841 = vmatpush3.bf16.msra.mxu1 %v840_v63 }
  0x49   :  { %842 = vmatprep.subr.bf16.mxu1 %v915_v2  ;;  %p874_p3 = por %p873_p2, %p872_p1 }
  0x4a   :  { %817 = vmatpush3.bf16.msra.mxu0 %v816_v3 }
  0x4b   :  { %818 = vmatprep.subr.bf16.mxu0 %v915_v2  ;;  %p875_p4 = pnand %p874_p3, %p868_p0 }
  0x4c   :  { %844 = vmatpush3.bf16.msra.mxu1 %v843_v6 }
  0x4d   :  { %845 = vmatprep.subr.bf16.mxu1 %v915_v2 }
  0x4e   :  { %820 = vmatpush3.bf16.msra.mxu0 %v819_v9 }
  0x4f   :  { %821 = vmatprep.subr.bf16.mxu0 %v915_v2 }
  0x50   :  { %847 = vmatpush3.bf16.msra.mxu1 %v846_v12 }
  0x51   :  { %848 = vmatprep.subr.bf16.mxu1 %v915_v2 }
  0x52   :  { %823 = vmatpush3.bf16.msra.mxu0 %v822_v13 }
  0x53   :  { %824 = vmatprep.subr.bf16.mxu0 %v915_v2 }
  0x54   :  { %850 = vmatpush3.bf16.msra.mxu1 %v849_v19 }
  0x55   :  { %851 = vmatprep.subr.bf16.mxu1 %v915_v2 }
  0x56   :  { %826 = vmatpush3.bf16.msra.mxu0 %v825_v17 }
  0x57   :  { %827 = vmatprep.subr.bf16.mxu0 %v915_v2 }
  0x58   :  { %853 = vmatpush3.bf16.msra.mxu1 %v852_v27 }
  0x59   :  { %854 = vmatprep.subr.bf16.mxu1 %v915_v2 }
  0x5a   :  { %829 = vmatpush3.bf16.msra.mxu0 %v828_v23 }
  0x5b   :  { %830 = vmatprep.subr.bf16.mxu0 %v915_v2 }
  0x5c   :  { %856 = vmatpush3.bf16.msra.mxu1 %v855_v31 }
  0x5d   :  { %857 = vmatprep.subr.bf16.mxu1 %v915_v2 }
  0x5e   :  { %832 = vmatpush3.bf16.msra.mxu0 %v831_v30 }
  0x5f   :  { %833 = vmatprep.subr.bf16.mxu0 %v915_v2 }
  0x60   :  { %859 = vmatpush3.bf16.msra.mxu1 %v858_v37 }
  0x62   :  { %835 = vmatpush3.bf16.msra.mxu0 %v834_v35 }
 0x116   :  { %v297_v38 = vpop.f32.mrb[0].mxu1 }
 0x117   :  { %v301_v39 = vmax.f32 %v297_v38, 1e-24  ;;  %v677_v40 = vpop.f32.mrb[1].mxu1 }
 0x118   :  { %v159_v41 = vpop.f32.mrb[0].mxu0 }
 0x119   :  { %865 = vrsqrt.f32 %v301_v39  ;;  %v642_v42 = vpop.f32.mrb[1].mxu0 }
 0x123   :  { %v866_v43 = vpop.eup %865 }
 0x124   :  { %v303_v44 = vmul.f32 %v866_v43, %v159_v41 }
 0x126   :  { %711 = vmatmul.mubr.f32.vlgmr.msra.gmra.mrb[2].mxu0 %v303_v44  ;;  %746 = vmatmul.mubr.f32.vlgmr.msra.gmra.mrb[2].mxu1 %v303_v44 }
 0x1f9   :  { %v386_v2 = vpop.f32.mrb[2].mxu0  ;;  %v473_v45 = vpop.f32.mrb[2].mxu1 }
 0x1fa   :  { %390 = vst [vmem:[#allocation2] sm:$0xff] %v386_v2  ;;  %477 = vst [vmem:[#allocation4] sm:$0xff] %v473_v45  ;;  %v712_v46 = vpop.f32.mrb[3].mxu0  ;;  %v747_v47 = vpop.f32.mrb[3].mxu1 }
 0x1fb   :  { %878 = shalt.err (!%p875_p4)
}
 0x1fc   :  { %s879_s27 = scalar_lea.hbm %s1266_s5, 128 }
 0x1fd   :  { %p880_p5 = scmp.ne.s32.totalorder %s1266_s5, %s879_s27  ;;  %p883_p6 = scmp.lt.u32.totalorder %s879_s27, %s1266_s5 }
 0x1ff   :  { %p885_p7 = pnand %p883_p6, %p880_p5 }
 0x201   :  { %888 = shalt.err (!%p885_p7)
}
 0x202   :  { %487 = dma.vmem_to_hbm [thread:$0]  %s485_s22, 128, %s1266_s5, [#allocation3]  }
 0x203   :  { %s889_s10 = scalar_lea.vmem %s1230_s24, 128  ;;  %p894_p9 = scmp.lt.s32.totalorder %s1230_s24, %s1230_s24 }
 0x204   :  { %p890_p8 = scmp.ne.s32.totalorder %s1230_s24, %s889_s10  ;;  %p895_p10 = scmp.lt.s32.totalorder %s889_s10, %s889_s10 }
 0x206   :  { %p896_p11 = por %p895_p10, %p894_p9 }
 0x208   :  { %p897_p12 = pnand %p896_p11, %p890_p8 }
 0x20a   :  { %900 = shalt.err (!%p897_p12)
}
 0x20b   :  { %s901_s13 = scalar_lea.hbm %s1267_s6, 128 }
 0x20c   :  { %p902_p13 = scmp.ne.s32.totalorder %s1267_s6, %s901_s13  ;;  %p905_p0 = scmp.lt.u32.totalorder %s901_s13, %s1267_s6 }
 0x20e   :  { %p907_p1 = pnand %p905_p0, %p902_p13 }
 0x210   :  { %910 = shalt.err (!%p907_p1)
}
 0x211   :  { %497 = dma.vmem_to_hbm [thread:$0]  %s1230_s24, 128, %s1267_s6, [#allocation5]  }
 0x212   :  { %911 = dma.done.wait [#allocation3], 128  }
 0x213   :  { %912 = vsyncadd [#allocation3], 4294967168 }
 0x214   :  { %913 = dma.done.wait [#allocation5], 128  }
 0x215   :  { %914 = vsyncadd [#allocation5], 4294967168 }
 0x216   :  { %504 = vsyncpa [#allocation3], 1 }
 0x217   :  { %505 = vsyncpa [#allocation5], 1 }

// kernel: tpu_custom_call.1
= control target key start
LH: loop header
LB: loop body
LE: loop exit
PB: predicated region body
PF: predicated region fallthrough
CT: control target
= control target key end

     0   :  { %12 = vsyncpa [#allocation3], 0  ;;  %vm41_vm0 = vcmask 261120   ;;  %v915_v2 = vmov 0.0|0.0   ;;  %vm916_vm2 = vmmov 0   ;;  %v917_v7 = vmov 0.0   ;;  %s1261_s0 = inlined_call_operand.vmem [shape: f32[8,32], index: 0, kind: input, shape index: {}]   ;;  %s1262_s1 = inlined_call_operand.vmem [shape: f32[128,32], index: 1, kind: input, shape index: {}]   ;;  %s1263_s2 = inlined_call_operand.vmem [shape: f32[128,32], index: 2, kind: input, shape index: {}]   ;;  %s1264_s3 = inlined_call_operand.vmem [shape: f32[128,128], index: 3, kind: input, shape index: {}]   ;;  %s1265_s4 = inlined_call_operand.vmem [shape: f32[128,128], index: 4, kind: input, shape index: {}]   ;;  %s1266_s5 = inlined_call_operand.hbm [shape: f32[8,128], index: 5, kind: output, shape index: {0}]   ;;  %s1267_s6 = inlined_call_operand.hbm [shape: f32[8,128], index: 6, kind: output, shape index: {1}]  }
   0x1   :  { %v164_v0 = vld [vmem:[%s1263_s2] sm:$0xff]  ;;  %v165_v1 = vld [vmem:[%s1263_s2 + $0x8] sm:$0xff]  ;;  %780 = vmatprep.subr.bf16.mxu1 %v915_v2  ;;  %vm964_vm1 = vmpackc.low %vm41_vm0, %vm41_vm0  ;;  %748 = vmatprep.subr.bf16.mxu0 %v915_v2 }
   0x2   :  { %v781_v4 = vpack.c.bf16 %v165_v1, %v164_v0  ;;  %v25_v5 = vld [vmem:[%s1262_s1] sm:$0xff]  ;;  %v26_v6 = vld [vmem:[%s1262_s1 + $0x8] sm:$0xff]  ;;  %675 = vmatprep.mubr.msk.f32.mxu1 %vm916_vm2, %v917_v7  ;;  %640 = vmatprep.mubr.msk.f32.mxu0 %vm916_vm2, %v917_v7  ;;  %v166_v9 = vld [vmem:[%s1263_s2 + $0x10] sm:$0xff] }
   0x3   :  { %v749_v8 = vpack.c.bf16 %v26_v6, %v25_v5  ;;  %v167_v10 = vld [vmem:[%s1263_s2 + $0x18] sm:$0xff]  ;;  %v27_v11 = vld [vmem:[%s1262_s1 + $0x10] sm:$0xff]  ;;  %v168_v15 = vld [vmem:[%s1263_s2 + $0x20] sm:$0xff] }
   0x4   :  { %783 = vmatpush3.bf16.xpose.msk.msra.mxu1 %vm964_vm1, %v781_v4  ;;  %v28_v12 = vld [vmem:[%s1262_s1 + $0x18] sm:$0xff]  ;;  %v785_v13 = vpack.c.bf16 %v167_v10, %v166_v9  ;;  %v169_v16 = vld [vmem:[%s1263_s2 + $0x28] sm:$0xff]  ;;  %v29_v17 = vld [vmem:[%s1262_s1 + $0x20] sm:$0xff] }
   0x5   :  { %784 = vmatprep.subr.bf16.mxu1 %v915_v2  ;;  %751 = vmatpush3.bf16.xpose.msk.msra.mxu0 %vm964_vm1, %v749_v8  ;;  %v753_v14 = vpack.c.bf16 %v28_v12, %v27_v11  ;;  %v30_v18 = vld [vmem:[%s1262_s1 + $0x28] sm:$0xff]  ;;  %v789_v19 = vpack.c.bf16 %v169_v16, %v168_v15 }
   0x6   :  { %752 = vmatprep.subr.bf16.mxu0 %v915_v2 }
   0xc   :  { %787 = vmatpush3.bf16.xpose.msk.msra.mxu1 %vm964_vm1, %v785_v13 }
   0xd   :  { %788 = vmatprep.subr.bf16.mxu1 %v915_v2  ;;  %755 = vmatpush3.bf16.xpose.msk.msra.mxu0 %vm964_vm1, %v753_v14 }
   0xe   :  { %756 = vmatprep.subr.bf16.mxu0 %v915_v2 }
   0xf   :  { %13 = vsyncpa [#allocation5], 0  ;;  %v757_v20 = vpack.c.bf16 %v30_v18, %v29_v17  ;;  %v170_v21 = vld [vmem:[%s1263_s2 + $0x30] sm:$0xff]  ;;  %v171_v22 = vld [vmem:[%s1263_s2 + $0x38] sm:$0xff]  ;;  %s919_s23 = smov [#allocation4]  }
  0x10   :  { %v31_v23 = vld [vmem:[%s1262_s1 + $0x30] sm:$0xff]  ;;  %v32_v24 = vld [vmem:[%s1262_s1 + $0x38] sm:$0xff]  ;;  %v793_v25 = vpack.c.bf16 %v171_v22, %v170_v21  ;;  %v172_v27 = vld [vmem:[%s1263_s2 + $0x40] sm:$0xff]  ;;  %s494_s24 = sshll.u32 %s919_s23, 4  ;;  %s1230_s24 = int_to_ptr.vmem [resolvable:$true] %s494_s24 }
  0x11   :  { %v761_v26 = vpack.c.bf16 %v32_v24, %v31_v23  ;;  %v173_v28 = vld [vmem:[%s1263_s2 + $0x48] sm:$0xff]  ;;  %v33_v29 = vld [vmem:[%s1262_s1 + $0x40] sm:$0xff]  ;;  %v174_v33 = vld [vmem:[%s1263_s2 + $0x50] sm:$0xff] }
  0x12   :  { %v34_v30 = vld [vmem:[%s1262_s1 + $0x48] sm:$0xff]  ;;  %v797_v31 = vpack.c.bf16 %v173_v28, %v172_v27  ;;  %v175_v34 = vld [vmem:[%s1263_s2 + $0x58] sm:$0xff]  ;;  %v35_v35 = vld [vmem:[%s1262_s1 + $0x50] sm:$0xff] }
  0x13   :  { %v765_v32 = vpack.c.bf16 %v34_v30, %v33_v29  ;;  %v36_v36 = vld [vmem:[%s1262_s1 + $0x58] sm:$0xff]  ;;  %v801_v37 = vpack.c.bf16 %v175_v34, %v174_v33  ;;  %v176_v39 = vld [vmem:[%s1263_s2 + $0x60] sm:$0xff]  ;;  %v177_v40 = vld [vmem:[%s1263_s2 + $0x68] sm:$0xff] }
  0x14   :  { %791 = vmatpush3.bf16.xpose.msk.msra.mxu1 %vm964_vm1, %v789_v19  ;;  %v769_v38 = vpack.c.bf16 %v36_v36, %v35_v35  ;;  %v37_v41 = vld [vmem:[%s1262_s1 + $0x60] sm:$0xff]  ;;  %v38_v42 = vld [vmem:[%s1262_s1 + $0x68] sm:$0xff]  ;;  %v805_v43 = vpack.c.bf16 %v177_v40, %v176_v39  ;;  %v178_v45 = vld [vmem:[%s1263_s2 + $0x70] sm:$0xff] }
  0x15   :  { %792 = vmatprep.subr.bf16.mxu1 %v915_v2  ;;  %759 = vmatpush3.bf16.xpose.msk.msra.mxu0 %vm964_vm1, %v757_v20  ;;  %v773_v44 = vpack.c.bf16 %v38_v42, %v37_v41  ;;  %v179_v46 = vld [vmem:[%s1263_s2 + $0x78] sm:$0xff]  ;;  %v39_v47 = vld [vmem:[%s1262_s1 + $0x70] sm:$0xff]  ;;  %v24_v51 = vld [vmem:[%s1261_s0] sm:$0xff] }
  0x16   :  { %760 = vmatprep.subr.bf16.mxu0 %v915_v2  ;;  %v40_v48 = vld [vmem:[%s1262_s1 + $0x78] sm:$0xff]  ;;  %v809_v49 = vpack.c.bf16 %v179_v46, %v178_v45  ;;  %v391_v52 = vld [vmem:[%s1265_s4] sm:$0xff]  ;;  %v392_v53 = vld [vmem:[%s1265_s4 + $0x8] sm:$0xff]  ;;  %v163_v54 = vmul.f32 %v24_v51, %v24_v51 }
  0x17   :  { %v777_v50 = vpack.c.bf16 %v40_v48, %v39_v47  ;;  %v304_v55 = vld [vmem:[%s1264_s3] sm:$0xff]  ;;  %v305_v56 = vld [vmem:[%s1264_s3 + $0x8] sm:$0xff]  ;;  %v837_v57 = vpack.c.bf16 %v392_v53, %v391_v52  ;;  %v393_v58 = vld [vmem:[%s1265_s4 + $0x10] sm:$0xff] }
  0x18   :  { %v394_v59 = vld [vmem:[%s1265_s4 + $0x18] sm:$0xff]  ;;  %v813_v60 = vpack.c.bf16 %v305_v56, %v304_v55  ;;  %v306_v61 = vld [vmem:[%s1264_s3 + $0x10] sm:$0xff]  ;;  %v395_v0 = vld [vmem:[%s1265_s4 + $0x20] sm:$0xff] }
  0x19   :  { %v307_v62 = vld [vmem:[%s1264_s3 + $0x18] sm:$0xff]  ;;  %v840_v63 = vpack.c.bf16 %v394_v59, %v393_v58  ;;  %v396_v1 = vld [vmem:[%s1265_s4 + $0x28] sm:$0xff]  ;;  %v308_v4 = vld [vmem:[%s1264_s3 + $0x20] sm:$0xff] }
  0x1a   :  { %v816_v3 = vpack.c.bf16 %v307_v62, %v306_v61  ;;  %v309_v5 = vld [vmem:[%s1264_s3 + $0x28] sm:$0xff]  ;;  %v843_v6 = vpack.c.bf16 %v396_v1, %v395_v0  ;;  %v397_v8 = vld [vmem:[%s1265_s4 + $0x30] sm:$0xff]  ;;  %v311_v11 = vld [vmem:[%s1264_s3 + $0x38] sm:$0xff] }
  0x1b   :  { %v819_v9 = vpack.c.bf16 %v309_v5, %v308_v4  ;;  %v310_v10 = vld [vmem:[%s1264_s3 + $0x30] sm:$0xff]  ;;  %v312_v14 = vld [vmem:[%s1264_s3 + $0x40] sm:$0xff]  ;;  %v313_v15 = vld [vmem:[%s1264_s3 + $0x48] sm:$0xff] }
  0x1c   :  { %795 = vmatpush3.bf16.xpose.msk.msra.mxu1 %vm964_vm1, %v793_v25  ;;  %v822_v13 = vpack.c.bf16 %v311_v11, %v310_v10  ;;  %v399_v16 = vld [vmem:[%s1265_s4 + $0x40] sm:$0xff]  ;;  %v825_v17 = vpack.c.bf16 %v313_v15, %v312_v14  ;;  %v400_v18 = vld [vmem:[%s1265_s4 + $0x48] sm:$0xff]  ;;  %v314_v20 = vld [vmem:[%s1264_s3 + $0x50] sm:$0xff] }
  0x1d   :  { %796 = vmatprep.subr.bf16.mxu1 %v915_v2  ;;  %763 = vmatpush3.bf16.xpose.msk.msra.mxu0 %vm964_vm1, %v761_v26  ;;  %v849_v19 = vpack.c.bf16 %v400_v18, %v399_v16  ;;  %v315_v21 = vld [vmem:[%s1264_s3 + $0x58] sm:$0xff]  ;;  %v401_v22 = vld [vmem:[%s1265_s4 + $0x50] sm:$0xff]  ;;  %v316_v25 = vld [vmem:[%s1264_s3 + $0x60] sm:$0xff] }
  0x1e   :  { %764 = vmatprep.subr.bf16.mxu0 %v915_v2  ;;  %v828_v23 = vpack.c.bf16 %v315_v21, %v314_v20  ;;  %v402_v24 = vld [vmem:[%s1265_s4 + $0x58] sm:$0xff]  ;;  %v317_v26 = vld [vmem:[%s1264_s3 + $0x68] sm:$0xff]  ;;  %v403_v28 = vld [vmem:[%s1265_s4 + $0x60] sm:$0xff] }
  0x1f   :  { %v852_v27 = vpack.c.bf16 %v402_v24, %v401_v22  ;;  %v404_v29 = vld [vmem:[%s1265_s4 + $0x68] sm:$0xff]  ;;  %v831_v30 = vpack.c.bf16 %v317_v26, %v316_v25  ;;  %v319_v33 = vld [vmem:[%s1264_s3 + $0x78] sm:$0xff]  ;;  %v405_v34 = vld [vmem:[%s1265_s4 + $0x70] sm:$0xff] }
  0x20   :  { %v406_v36 = vld [vmem:[%s1265_s4 + $0x78] sm:$0xff] }
  0x24   :  { %799 = vmatpush3.bf16.xpose.msk.msra.mxu1 %vm964_vm1, %v797_v31  ;;  %v855_v31 = vpack.c.bf16 %v404_v29, %v403_v28 }
  0x25   :  { %800 = vmatprep.subr.bf16.mxu1 %v915_v2  ;;  %767 = vmatpush3.bf16.xpose.msk.msra.mxu0 %vm964_vm1, %v765_v32  ;;  %v318_v32 = vld [vmem:[%s1264_s3 + $0x70] sm:$0xff]  ;;  %s918_s3 = smov [#allocation2]  }
  0x26   :  { %768 = vmatprep.subr.bf16.mxu0 %v915_v2  ;;  %v834_v35 = vpack.c.bf16 %v319_v33, %v318_v32  ;;  %s484_s22 = sshll.u32 %s918_s3, 4  ;;  %s485_s22 = int_to_ptr.vmem [resolvable:$true] %s484_s22 }
  0x27   :  { %p872_p1 = scmp.lt.s32.totalorder %s485_s22, %s485_s22 }
  0x2c   :  { %803 = vmatpush3.bf16.xpose.msk.msra.mxu1 %vm964_vm1, %v801_v37  ;;  %v858_v37 = vpack.c.bf16 %v406_v36, %v405_v34 }
  0x2d   :  { %804 = vmatprep.subr.bf16.mxu1 %v915_v2  ;;  %771 = vmatpush3.bf16.xpose.msk.msra.mxu0 %vm964_vm1, %v769_v38 }
  0x2e   :  { %772 = vmatprep.subr.bf16.mxu0 %v915_v2 }
  0x34   :  { %807 = vmatpush3.bf16.xpose.msk.msra.mxu1 %vm964_vm1, %v805_v43 }
  0x35   :  { %808 = vmatprep.subr.bf16.mxu1 %v915_v2  ;;  %775 = vmatpush3.bf16.xpose.msk.msra.mxu0 %vm964_vm1, %v773_v44 }
  0x36   :  { %776 = vmatprep.subr.bf16.mxu0 %v915_v2 }
  0x3c   :  { %811 = vmatpush3.bf16.xpose.msk.msra.mxu1 %vm964_vm1, %v809_v49 }
  0x3d   :  { %836 = vmatprep.subr.bf16.mxu1 %v915_v2  ;;  %779 = vmatpush3.bf16.xpose.msk.msra.mxu0 %vm964_vm1, %v777_v50 }
  0x3e   :  { %812 = vmatprep.subr.bf16.mxu0 %v915_v2 }
  0x43   :  { %676 = vmatmul.mubr.msk.f32.vlgmr.msra.gmra.mrb[0].mxu1 %vm41_vm0, %v163_v54 }
  0x44   :  { %838 = vmatpush3.bf16.msra.mxu1 %v837_v57  ;;  %745 = vmatprep.mubr.msk.f32.mxu1 %vm916_vm2, %v917_v7 }
  0x45   :  { %641 = vmatmul.mubr.msk.f32.vlgmr.msra.gmra.mrb[0].mxu0 %vm41_vm0, %v24_v51  ;;  %839 = vmatprep.subr.bf16.mxu1 %v915_v2 }
  0x46   :  { %814 = vmatpush3.bf16.msra.mxu0 %v813_v60  ;;  %710 = vmatprep.mubr.msk.f32.mxu0 %vm916_vm2, %v917_v7  ;;  %v398_v7 = vld [vmem:[%s1265_s4 + $0x38] sm:$0xff]  ;;  %s867_s4 = scalar_lea.vmem %s485_s22, 128 }
  0x47   :  { %815 = vmatprep.subr.bf16.mxu0 %v915_v2  ;;  %v846_v12 = vpack.c.bf16 %v398_v7, %v397_v8  ;;  %p868_p0 = scmp.ne.s32.totalorder %s485_s22, %s867_s4  ;;  %p873_p2 = scmp.lt.s32.totalorder %s867_s4, %s867_s4 }
  0x48   :  { %841 = vmatpush3.bf16.msra.mxu1 %v840_v63 }
  0x49   :  { %842 = vmatprep.subr.bf16.mxu1 %v915_v2  ;;  %p874_p3 = por %p873_p2, %p872_p1 }
  0x4a   :  { %817 = vmatpush3.bf16.msra.mxu0 %v816_v3 }
  0x4b   :  { %818 = vmatprep.subr.bf16.mxu0 %v915_v2  ;;  %p875_p4 = pnand %p874_p3, %p868_p0 }
  0x4c   :  { %844 = vmatpush3.bf16.msra.mxu1 %v843_v6 }
  0x4d   :  { %845 = vmatprep.subr.bf16.mxu1 %v915_v2 }
  0x4e   :  { %820 = vmatpush3.bf16.msra.mxu0 %v819_v9 }
  0x4f   :  { %821 = vmatprep.subr.bf16.mxu0 %v915_v2 }
  0x50   :  { %847 = vmatpush3.bf16.msra.mxu1 %v846_v12 }
  0x51   :  { %848 = vmatprep.subr.bf16.mxu1 %v915_v2 }
  0x52   :  { %823 = vmatpush3.bf16.msra.mxu0 %v822_v13 }
  0x53   :  { %824 = vmatprep.subr.bf16.mxu0 %v915_v2 }
  0x54   :  { %850 = vmatpush3.bf16.msra.mxu1 %v849_v19 }
  0x55   :  { %851 = vmatprep.subr.bf16.mxu1 %v915_v2 }
  0x56   :  { %826 = vmatpush3.bf16.msra.mxu0 %v825_v17 }
  0x57   :  { %827 = vmatprep.subr.bf16.mxu0 %v915_v2 }
  0x58   :  { %853 = vmatpush3.bf16.msra.mxu1 %v852_v27 }
  0x59   :  { %854 = vmatprep.subr.bf16.mxu1 %v915_v2 }
  0x5a   :  { %829 = vmatpush3.bf16.msra.mxu0 %v828_v23 }
  0x5b   :  { %830 = vmatprep.subr.bf16.mxu0 %v915_v2 }
  0x5c   :  { %856 = vmatpush3.bf16.msra.mxu1 %v855_v31 }
  0x5d   :  { %857 = vmatprep.subr.bf16.mxu1 %v915_v2 }
  0x5e   :  { %832 = vmatpush3.bf16.msra.mxu0 %v831_v30 }
  0x5f   :  { %833 = vmatprep.subr.bf16.mxu0 %v915_v2 }
  0x60   :  { %859 = vmatpush3.bf16.msra.mxu1 %v858_v37 }
  0x62   :  { %835 = vmatpush3.bf16.msra.mxu0 %v834_v35 }
 0x116   :  { %v297_v38 = vpop.f32.mrb[0].mxu1 }
 0x117   :  { %v301_v39 = vmax.f32 %v297_v38, 1e-24  ;;  %v677_v40 = vpop.f32.mrb[1].mxu1 }
 0x118   :  { %v159_v41 = vpop.f32.mrb[0].mxu0 }
 0x119   :  { %865 = vrsqrt.f32 %v301_v39  ;;  %v642_v42 = vpop.f32.mrb[1].mxu0 }
 0x123   :  { %v866_v43 = vpop.eup %865 }
 0x124   :  { %v303_v44 = vmul.f32 %v866_v43, %v159_v41 }
 0x126   :  { %711 = vmatmul.mubr.f32.vlgmr.msra.gmra.mrb[2].mxu0 %v303_v44  ;;  %746 = vmatmul.mubr.f32.vlgmr.msra.gmra.mrb[2].mxu1 %v303_v44 }
 0x1f9   :  { %v386_v2 = vpop.f32.mrb[2].mxu0  ;;  %v473_v45 = vpop.f32.mrb[2].mxu1 }
 0x1fa   :  { %390 = vst [vmem:[#allocation2] sm:$0xff] %v386_v2  ;;  %477 = vst [vmem:[#allocation4] sm:$0xff] %v473_v45  ;;  %v712_v46 = vpop.f32.mrb[3].mxu0  ;;  %v747_v47 = vpop.f32.mrb[3].mxu1 }
 0x1fb   :  { %878 = shalt.err (!%p875_p4)
}
 0x1fc   :  { %s879_s27 = scalar_lea.hbm %s1266_s5, 128 }
 0x1fd   :  { %p880_p5 = scmp.ne.s32.totalorder %s1266_s5, %s879_s27  ;;  %p883_p6 = scmp.lt.u32.totalorder %s879_s27, %s1266_s5 }
 0x1ff   :  { %p885_p7 = pnand %p883_p6, %p880_p5 }
 0x201   :  { %888 = shalt.err (!%p885_p7)
}
 0x202   :  { %487 = dma.vmem_to_hbm [thread:$0]  %s485_s22, 128, %s1266_s5, [#allocation3]  }
 0x203   :  { %s889_s10 = scalar_lea.vmem %s1230_s24, 128  ;;  %p894_p9 = scmp.lt.s32.totalorder %s1230_s24, %s1230_s24 }
 0x204   :  { %p890_p8 = scmp.ne.s32.totalorder %s1230_s24, %s889_s10  ;;  %p895_p10 = scmp.lt.s32.totalorder %s889_s10, %s889_s10 }
 0x206   :  { %p896_p11 = por %p895_p10, %p894_p9 }
 0x208   :  { %p897_p12 = pnand %p896_p11, %p890_p8 }
 0x20a   :  { %900 = shalt.err (!%p897_p12)
}
 0x20b   :  { %s901_s13 = scalar_lea.hbm %s1267_s6, 128 }
 0x20c   :  { %p902_p13 = scmp.ne.s32.totalorder %s1267_s6, %s901_s13  ;;  %p905_p0 = scmp.lt.u32.totalorder %s901_s13, %s1267_s6 }
 0x20e   :  { %p907_p1 = pnand %p905_p0, %p902_p13 }
 0x210   :  { %910 = shalt.err (!%p907_p1)
}
 0x211   :  { %497 = dma.vmem_to_hbm [thread:$0]  %s1230_s24, 128, %s1267_s6, [#allocation5]  }
 0x212   :  { %911 = dma.done.wait [#allocation3], 128  }
 0x213   :  { %912 = vsyncadd [#allocation3], 4294967168 }
 0x214   :  { %913 = dma.done.wait [#allocation5], 128  }
 0x215   :  { %914 = vsyncadd [#allocation5], 4294967168 }
 0x216   :  { %504 = vsyncpa [#allocation3], 1 }
 0x217   :  { %505 = vsyncpa [#allocation5], 1 }

</bundles_post_ra>
